<compile_context>
chip_gen: v7x
topology: tpu7x:2x2x1
jax: 0.10.0
libtpu: 0.0.40
codegen_flags: <defaults>
</compile_context>

<pallas_src>
import math

import jax
import jax.numpy as jnp
from jax import lax
from jax.experimental import pallas as pl
from jax.experimental.pallas import tpu as pltpu


_VMEM_BUDGET = 40 * 1024 * 1024          # design footprint; fits v7x 64 MiB/core


def _round_up(n, m):
    return ((n + m - 1) // m) * m


def _cdiv(a, b):
    return -(-a // b)


def _pad2(a, rows, cols):
    r, c = a.shape
    if (r, c) == (rows, cols):
        return a
    return jnp.pad(a, ((0, rows - r), (0, cols - c)))


# ---------------------------------------------------------------------------
# Tiling plan (static, Python-level)
# ---------------------------------------------------------------------------
def _plan(B, D, C):
    Cp = _round_up(C, 128)                       # classes -> lane multiple
    B16 = _round_up(max(B, 1), 16)               # 16: bf16 sublane-pack quantum
    D128 = _round_up(max(D, 1), 128)

    # ---- batch tile: big (amortize ~0.35us/step), but >=2 blocks on the
    # "parallel" axis when possible (v7x megacore), and keep the resident
    # [tB, Cp] f32 output/accumulator bounded for large class counts.
    tB = min(512, B16)
    if B16 >= 32:
        tB = min(tB, _round_up(_cdiv(B16, 2), 16))
    while tB > 16 and 3 * tB * Cp * 4 > _VMEM_BUDGET // 2:
        tB = max(16, (tB // 2) // 16 * 16)
    Bp = _round_up(B16, tB)

    # ---- D tile / weight residency ----
    out_bytes = 3 * tB * Cp * 4                  # out/acc block + writeback buffer
    remaining = max(_VMEM_BUDGET - out_bytes, 4 * 1024 * 1024)
    w_full_bytes = 2 * (D128 * 2 * Cp * 2)       # [Dp, 2*Cp] bf16, x2 buffer margin
    resident = (w_full_bytes + 2 * tB * 256 * 2) <= remaining
    if resident:
        x_budget = remaining - w_full_bytes
        td_cap = (x_budget // (2 * tB * 2)) // 128 * 128          # bf16 x, dbuf
    else:
        per_td = 2 * tB * 2 + 2 * 2 * Cp * 2                      # x dbuf + W dbuf per row
        td_cap = (remaining // per_td) // 128 * 128
    td_cap = int(min(max(td_cap, 128), 4096))

    # pick tD as the 128-multiple that near-divides D128 (minimal zero padding)
    n_k = _cdiv(D128, td_cap)
    tD = _round_up(_cdiv(D128, n_k), 128)
    Dp = n_k * tD
    return tB, Bp, tD, Dp, Cp, resident


# ---------------------------------------------------------------------------
# Kernel factory
# ---------------------------------------------------------------------------
def _make_kernel(tD, Cp, resident, labeled):
    def kernel(*refs):
        if labeled:
            x_ref, w_ref, bias_ref, lbl_ref, out_ref, acc_ref = refs
        else:
            x_ref, w_ref, bias_ref, out_ref = refs
            acc_ref = out_ref                    # accumulate straight into output

        k = pl.program_id(1)

        @pl.when(k == 0)
        def _():
            acc_ref[...] = jnp.zeros_like(acc_ref)

        d0 = pl.multiple_of(k * tD, tD) if resident else 0
        w1 = w_ref[pl.ds(d0, tD), pl.ds(0, Cp)]      # inv_var^T          [tD, Cp] bf16
        w2 = w_ref[pl.ds(d0, tD), pl.ds(Cp, Cp)]     # (-2*mu*inv_var)^T  [tD, Cp] bf16

        x = x_ref[...]                               # [tB, tD] bf16
        # single read-modify-write of the accumulator per step (vst-slot friendly)
        acc_ref[...] += (
            jnp.dot(x * x, w1, preferred_element_type=jnp.float32)
            + jnp.dot(x, w2, preferred_element_type=jnp.float32))

        @pl.when(k == pl.num_programs(1) - 1)
        def _():
            # bias already holds -0.5*sum(mu^2*iv) - sum(logstd) - 0.5*D*log(2*pi)
            logp = -0.5 * acc_ref[...] + bias_ref[...]           # [tB, Cp] f32
            if labeled:
                tB = logp.shape[0]
                lbl = lbl_ref[...]                                # [tB, 1] int32
                col = lax.broadcasted_iota(jnp.int32, (tB, Cp), 1)
                val = jnp.sum(jnp.where(col == lbl, logp, 0.0),
                              axis=1, keepdims=True)              # [tB, 1]
                # lane-dense broadcast store; wrapper takes [:, 0]
                out_ref[...] = jnp.broadcast_to(val, out_ref.shape).astype(out_ref.dtype)
            else:
                out_ref[...] = logp.astype(out_ref.dtype)

    return kernel


# ---------------------------------------------------------------------------
# x-independent prep (hoisted, plain JAX)
# ---------------------------------------------------------------------------
def _prep_weights(class_means, class_log_stds, Cp, Dp):
    mu = class_means.astype(jnp.float32)
    ls = class_log_stds.astype(jnp.float32)
    C, D = mu.shape
    inv_var = jnp.exp(-2.0 * ls)                                  # [C, D]
    w1 = inv_var.T                                                # [D, C]
    w2 = (-2.0 * mu * inv_var).T                                  # [D, C]
    const = -0.5 * float(D) * math.log(2.0 * math.pi)
    bias = (-0.5 * jnp.sum(mu * mu * inv_var, axis=1)
            - jnp.sum(ls, axis=1) + const)                        # [C], stays f32
    w1 = _pad2(w1, Dp, Cp)
    w2 = _pad2(w2, Dp, Cp)
    W = jnp.concatenate([w1, w2], axis=1).astype(jnp.bfloat16)    # [Dp, 2*Cp]
    bias = jnp.pad(bias, (0, Cp - C))[None, :]                    # [1, Cp] f32
    return W, bias


# ---------------------------------------------------------------------------
# pallas_call builder
# ---------------------------------------------------------------------------
def _pallas_log_probs(x_pad, W, bias, labels_pad, plan):
    tB, Bp, tD, Dp, Cp, resident = plan
    grid = (Bp // tB, Dp // tD)

    if resident:
        # constant block index -> whole weight array DMA'd into VMEM exactly once
        w_spec = pl.BlockSpec((Dp, 2 * Cp), lambda i, k: (0, 0))
    else:
        w_spec = pl.BlockSpec((tD, 2 * Cp), lambda i, k: (k, 0))

    in_specs = [
        pl.BlockSpec((tB, tD), lambda i, k: (i, k)),              # x tile (bf16)
        w_spec,                                                   # [w1 | w2] packed
        pl.BlockSpec((1, Cp), lambda i, k: (0, 0)),               # bias (f32)
    ]
    args = [x_pad, W, bias]

    labeled = labels_pad is not None
    if labeled:
        in_specs.append(pl.BlockSpec((tB, 1), lambda i, k: (i, 0)))   # int32 labels
        args.append(labels_pad)
        out_shape = jax.ShapeDtypeStruct((Bp, 128), jnp.float32)
        out_specs = pl.BlockSpec((tB, 128), lambda i, k: (i, 0))
        scratch_shapes = [pltpu.VMEM((tB, Cp), jnp.float32)]
    else:
        out_shape = jax.ShapeDtypeStruct((Bp, Cp), jnp.float32)
        out_specs = pl.BlockSpec((tB, Cp), lambda i, k: (i, 0))
        scratch_shapes = []

    return pl.pallas_call(
        _make_kernel(tD, Cp, resident, labeled),
        out_shape=out_shape,
        grid_spec=pltpu.PrefetchScalarGridSpec(
            num_scalar_prefetch=0,
            grid=grid,
            in_specs=in_specs,
            out_specs=out_specs,
            scratch_shapes=scratch_shapes,
        ),
        compiler_params=pltpu.CompilerParams(
            dimension_semantics=("parallel", "arbitrary"),
            vmem_limit_bytes=64 * 1024 * 1024,
        ),
    )(*args)


# ---------------------------------------------------------------------------
# Jitted wrappers
# ---------------------------------------------------------------------------
@jax.jit
def _log_probs_per_class_impl(x_flat, class_means, class_log_stds):
    B, D = x_flat.shape
    C = class_means.shape[0]
    plan = _plan(B, D, C)
    tB, Bp, tD, Dp, Cp, resident = plan
    x_pad = _pad2(x_flat.astype(jnp.bfloat16), Bp, Dp)
    W, bias = _prep_weights(class_means, class_log_stds, Cp, Dp)
    out = _pallas_log_probs(x_pad, W, bias, None, plan)
    return out[:B, :C]                                            # drop padding


@jax.jit
def _log_probs_labeled_impl(x_flat, class_means, class_log_stds, y):
    B, D = x_flat.shape
    C = class_means.shape[0]
    plan = _plan(B, D, C)
    tB, Bp, tD, Dp, Cp, resident = plan
    x_pad = _pad2(x_flat.astype(jnp.bfloat16), Bp, Dp)
    # argmax in the wrapper (first index on ties / all-zero rows -> 0, matching torch.argmax)
    labels = jnp.argmax(y, axis=1).astype(jnp.int32)[:, None]     # [B, 1]
    labels_pad = jnp.pad(labels, ((0, Bp - B), (0, 0)))
    W, bias = _prep_weights(class_means, class_log_stds, Cp, Dp)
    out = _pallas_log_probs(x_pad, W, bias, labels_pad, plan)
    return out[:B, 0]                                             # .squeeze(1)


def per_class_forward(x_nchw, class_means, class_log_stds, fixed=None):
    """Mirrors PerClass.forward: returns (x, logdet)."""
    B = x_nchw.shape[0]
    x_flat = x_nchw.reshape(B, -1)                                # NCHW -> [B, D]
    labeled = (fixed is not None and hasattr(fixed, "__getitem__")
               and "y" in fixed and fixed["y"] is not None)
    if labeled:
        logdet = _log_probs_labeled_impl(x_flat, class_means, class_log_stds,
                                         fixed["y"])              # [B]
    else:
        logdet = _log_probs_per_class_impl(x_flat, class_means,
                                           class_log_stds)        # [B, C]
    return x_nchw, logdet


# ---------------------------------------------------------------------------
# Pure-JAX reference for a sanity check
# ---------------------------------------------------------------------------
def _ref_log_probs(x_flat, mu, logstd):
    x = x_flat[:, None, :]          # [B, 1, D]
    m = mu[None, :, :]              # [1, C, D]
    ls = logstd[None, :, :]
    z = (x - m) * jnp.exp(-ls)
    return jnp.sum(-0.5 * z * z - ls - 0.5 * jnp.log(2.0 * jnp.pi), axis=-1)


if __name__ == "__main__":
    key = jax.random.PRNGKey(0)
    k_x, k_mu, k_ls, k_y = jax.random.split(key, 4)

    B, C_in, H, W = 2, 4, 16, 16
    n_classes = 8
    n_dims = C_in * H * W

    x = jax.random.normal(k_x, (B, C_in, H, W), dtype=jnp.float32)
    class_means = 0.1 * jax.random.normal(k_mu, (n_classes, n_dims), dtype=jnp.float32)
    class_log_stds = 0.05 * jax.random.normal(k_ls, (n_classes, n_dims), dtype=jnp.float32)

    # --- unlabeled path: logdet per class, shape [B, n_classes] ---
    x_out, logdet_pc = per_class_forward(x, class_means, class_log_stds, fixed=None)
    logdet_pc = jax.block_until_ready(logdet_pc)

    # --- labeled path: one-hot y, logdet shape [B] ---
    labels = jax.random.randint(k_y, (B,), 0, n_classes)
    y_onehot = jax.nn.one_hot(labels, n_classes, dtype=jnp.float32)
    _, logdet_lbl = per_class_forward(
        x, class_means, class_log_stds, fixed={"y": y_onehot}
    )
    logdet_lbl = jax.block_until_ready(logdet_lbl)

    # sanity checks against pure-JAX f32 reference (bf16 operands -> looser tol)
    x_flat = x.reshape(B, -1)
    ref_pc = _ref_log_probs(x_flat, class_means, class_log_stds)
    ref_lbl = jnp.take_along_axis(ref_pc, labels[:, None], axis=1)[:, 0]

    assert logdet_pc.shape == (B, n_classes)
    assert logdet_lbl.shape == (B,)
    assert jnp.allclose(logdet_pc, ref_pc, rtol=2e-3, atol=1e-2)
    assert jnp.allclose(logdet_lbl, ref_lbl, rtol=2e-3, atol=1e-2)
    assert jnp.allclose(x_out, x)

    print("KERNEL_OK")
</pallas_src>

<mosaic_0001>
module attributes {stable_mosaic.version = 11 : i64} {
  func.func @kernel(%arg0: i32, %arg1: i32, %arg2: memref<16x1024xbf16, #tpu.memory_space<vmem>>, %arg3: memref<1024x256xbf16, #tpu.memory_space<vmem>>, %arg4: memref<1x128xf32, #tpu.memory_space<vmem>>, %arg5: memref<16x128xf32, #tpu.memory_space<vmem>>) attributes {dimension_semantics = [#tpu.dimension_semantics<parallel>, #tpu.dimension_semantics<arbitrary>], iteration_bounds = array<i64: 1, 1>, scalar_prefetch = 0 : i64, scratch_operands = 0 : i64, tpu.core_type = #tpu.core_type<tc>, window_params = [{transform_indices = @transform_0, window_bounds = array<i64: 16, 1024>}, {pipeline_mode = #tpu.pipeline_mode<synchronous>, transform_indices = @transform_1, window_bounds = array<i64: 1024, 256>}, {pipeline_mode = #tpu.pipeline_mode<synchronous>, transform_indices = @transform_2, window_bounds = array<i64: 1, 128>}, {transform_indices = @transform_3, window_bounds = array<i64: 16, 128>}]} {
    %c0_i32 = arith.constant 0 : i32
    %0 = arith.cmpi eq, %arg1, %c0_i32 : i32
    %1 = arith.extui %0 : i1 to i32
    %c0_i32_0 = arith.constant 0 : i32
    %2 = arith.cmpi ne, %1, %c0_i32_0 : i32
    scf.if %2 {
      %cst_10 = arith.constant 0.000000e+00 : f32
      %20 = vector.broadcast %cst_10 : f32 to vector<16x128xf32>
      %c0_11 = arith.constant 0 : index
      %c0_12 = arith.constant 0 : index
      %21 = vector.load %arg5[%c0_11, %c0_12] : memref<16x128xf32, #tpu.memory_space<vmem>>, vector<16x128xf32>
      tpu.vector_store %arg5[%c0_11, %c0_12], %20 {strides = array<i32>} : memref<16x128xf32, #tpu.memory_space<vmem>>, vector<16x128xf32>,
    } else {
    }
    %c1024_i32 = arith.constant 1024 : i32
    %3 = arith.muli %arg1, %c1024_i32 : i32
    %4 = tpu.assume_multiple %3, 1024 : i32
    %5 = arith.index_cast %4 : i32 to index
    %c0 = arith.constant 0 : index
    %6 = vector.load %arg3[%5, %c0] : memref<1024x256xbf16, #tpu.memory_space<vmem>>, vector<1024x128xbf16>
    %7 = arith.index_cast %4 : i32 to index
    %c128 = arith.constant 128 : index
    %8 = vector.load %arg3[%7, %c128] : memref<1024x256xbf16, #tpu.memory_space<vmem>>, vector<1024x128xbf16>
    %c0_1 = arith.constant 0 : index
    %c0_2 = arith.constant 0 : index
    %9 = vector.load %arg2[%c0_1, %c0_2] : memref<16x1024xbf16, #tpu.memory_space<vmem>>, vector<16x1024xbf16>
    %c0_3 = arith.constant 0 : index
    %c0_4 = arith.constant 0 : index
    %10 = vector.load %arg5[%c0_3, %c0_4] : memref<16x128xf32, #tpu.memory_space<vmem>>, vector<16x128xf32>
    %11 = arith.mulf %9, %9 : vector<16x1024xbf16>
    %cst = arith.constant dense<0.000000e+00> : vector<16x128xf32>
    %12 = tpu.matmul %11, %6, %cst {dimension_numbers = #tpu.dot_dimension_numbers<[1], [0], [0], [1], [0, 0, 1, 1], [], []>} : vector<16x1024xbf16>, vector<1024x128xbf16>, vector<16x128xf32> -> vector<16x128xf32>
    %cst_5 = arith.constant dense<0.000000e+00> : vector<16x128xf32>
    %13 = tpu.matmul %9, %8, %cst_5 {dimension_numbers = #tpu.dot_dimension_numbers<[1], [0], [0], [1], [0, 0, 1, 1], [], []>} : vector<16x1024xbf16>, vector<1024x128xbf16>, vector<16x128xf32> -> vector<16x128xf32>
    %14 = arith.addf %12, %13 : vector<16x128xf32>
    %15 = arith.addf %10, %14 : vector<16x128xf32>
    %c0_6 = arith.constant 0 : index
    %c0_7 = arith.constant 0 : index
    %16 = vector.load %arg5[%c0_6, %c0_7] : memref<16x128xf32, #tpu.memory_space<vmem>>, vector<16x128xf32>
    tpu.vector_store %arg5[%c0_6, %c0_7], %15 {strides = array<i32>} : memref<16x128xf32, #tpu.memory_space<vmem>>, vector<16x128xf32>,
    %c0_i32_8 = arith.constant 0 : i32
    %17 = arith.cmpi eq, %arg1, %c0_i32_8 : i32
    %18 = arith.extui %17 : i1 to i32
    %c0_i32_9 = arith.constant 0 : i32
    %19 = arith.cmpi ne, %18, %c0_i32_9 : i32
    scf.if %19 {
      %c0_10 = arith.constant 0 : index
      %c0_11 = arith.constant 0 : index
      %20 = vector.load %arg5[%c0_10, %c0_11] : memref<16x128xf32, #tpu.memory_space<vmem>>, vector<16x128xf32>
      %cst_12 = arith.constant -5.000000e-01 : f32
      %21 = vector.broadcast %cst_12 : f32 to vector<16x128xf32>
      %22 = arith.mulf %21, %20 : vector<16x128xf32>
      %c0_13 = arith.constant 0 : index
      %c0_14 = arith.constant 0 : index
      %23 = vector.load %arg4[%c0_13, %c0_14] : memref<1x128xf32, #tpu.memory_space<vmem>>, vector<1x128xf32>
      %24 = vector.broadcast %23 : vector<1x128xf32> to vector<16x128xf32>
      %25 = arith.addf %22, %24 : vector<16x128xf32>
      %c0_15 = arith.constant 0 : index
      %c0_16 = arith.constant 0 : index
      %26 = vector.load %arg5[%c0_15, %c0_16] : memref<16x128xf32, #tpu.memory_space<vmem>>, vector<16x128xf32>
      tpu.vector_store %arg5[%c0_15, %c0_16], %25 {strides = array<i32>} : memref<16x128xf32, #tpu.memory_space<vmem>>, vector<16x128xf32>,
    } else {
    }
    return
  }
  func.func @transform_0(%arg0: i32, %arg1: i32) -> (i32, i32) {
    %c0_i32 = arith.constant 0 : i32
    return %arg0, %arg1 : i32, i32
  }
  func.func @transform_1(%arg0: i32, %arg1: i32) -> (i32, i32) {
    %c0_i32 = arith.constant 0 : i32
    %c0_i32_0 = arith.constant 0 : i32
    %c0_i32_1 = arith.constant 0 : i32
    return %c0_i32, %c0_i32_0 : i32, i32
  }
  func.func @transform_2(%arg0: i32, %arg1: i32) -> (i32, i32) {
    %c0_i32 = arith.constant 0 : i32
    %c0_i32_0 = arith.constant 0 : i32
    %c0_i32_1 = arith.constant 0 : i32
    return %c0_i32, %c0_i32_0 : i32, i32
  }
  func.func @transform_3(%arg0: i32, %arg1: i32) -> (i32, i32) {
    %c0_i32 = arith.constant 0 : i32
    %c0_i32_0 = arith.constant 0 : i32
    return %arg0, %c0_i32 : i32, i32
  }
}

</mosaic_0001>

<bundles_post_ra>
// kernel: _log_probs_per_class_impl.1
= control target key start
LH: loop header
LB: loop body
LE: loop exit
PB: predicated region body
PF: predicated region fallthrough
CT: control target
= control target key end

     0   :  { %8 = vsyncpa [#allocation3], 0  ;;  %s2273_s0 = inlined_call_operand.hbm [shape: bf16[16,1024], index: 0, kind: input, shape index: {}]   ;;  %s2274_s1 = inlined_call_operand.hbm [shape: bf16[1024,256], index: 1, kind: input, shape index: {}]   ;;  %s2275_s2 = inlined_call_operand.hbm [shape: f32[1,128], index: 2, kind: input, shape index: {}]   ;;  %s2276_s3 = inlined_call_operand.hbm [shape: f32[16,128], index: 3, kind: output, shape index: {}]  }
   0x1   :  { %9 = vsyncpa [#allocation6], 0 }
   0x2   :  { %10 = vsyncpa [#allocation4], 0  ;;  %s2111_s12 = smov [#allocation5]   ;;  %s2017_s16 = scalar_lea.hbm %s2274_s1, 16384 }
   0x3   :  { %s28_s13 = sshll.u32 %s2111_s12, 4  ;;  %p2018_p0 = scmp.ne.s32.totalorder %s2274_s1, %s2017_s16  ;;  %s29_s13 = int_to_ptr.vmem [resolvable:$true] %s28_s13 }
   0x4   :  { %p2021_p1 = scmp.lt.u32.totalorder %s2017_s16, %s2274_s1 }
   0x6   :  { %p2023_p2 = pnand %p2021_p1, %p2018_p0 }
   0x8   :  { %2026 = shalt.err (!%p2023_p2)
}
   0x9   :  { %s2027_s21 = scalar_lea.vmem %s29_s13, 16384  ;;  %p2032_p4 = scmp.lt.s32.totalorder %s29_s13, %s29_s13 }
   0xa   :  { %p2028_p3 = scmp.ne.s32.totalorder %s29_s13, %s2027_s21  ;;  %p2033_p5 = scmp.lt.s32.totalorder %s2027_s21, %s2027_s21 }
   0xc   :  { %p2034_p6 = por %p2033_p5, %p2032_p4 }
   0xe   :  { %p2035_p7 = pnand %p2034_p6, %p2028_p3 }
  0x10   :  { %2038 = shalt.err (!%p2035_p7)
}
  0x11   :  { %s2112_s22 = smov 128   ;;  %s2113_s23 = smov 8  }
  0x12   :  { %34 = dma.hbm_to_vmem [thread:$0]  %s2274_s1, 16384, %s29_s13, [#allocation6], %s2112_s22, %s2112_s22, %s2113_s23  }
  0x13   :  { %s2114_s26 = smov [#allocation2]   ;;  %s2039_s30 = scalar_lea.hbm %s2273_s0, 1024 }
  0x14   :  { %s16_s27 = sshll.u32 %s2114_s26, 4  ;;  %p2040_p8 = scmp.ne.s32.totalorder %s2273_s0, %s2039_s30  ;;  %s17_s27 = int_to_ptr.vmem [resolvable:$true] %s16_s27 }
  0x15   :  { %p2043_p9 = scmp.lt.u32.totalorder %s2039_s30, %s2273_s0 }
  0x17   :  { %p2045_p10 = pnand %p2043_p9, %p2040_p8 }
  0x19   :  { %2048 = shalt.err (!%p2045_p10)
}
  0x1a   :  { %s2049_s8 = scalar_lea.vmem %s17_s27, 1024  ;;  %p2054_p12 = scmp.lt.s32.totalorder %s17_s27, %s17_s27 }
  0x1b   :  { %p2050_p11 = scmp.ne.s32.totalorder %s17_s27, %s2049_s8  ;;  %p2055_p13 = scmp.lt.s32.totalorder %s2049_s8, %s2049_s8 }
  0x1d   :  { %p2056_p0 = por %p2055_p13, %p2054_p12 }
  0x1f   :  { %p2057_p1 = pnand %p2056_p0, %p2050_p11 }
  0x21   :  { %2060 = shalt.err (!%p2057_p1)
}
  0x22   :  { %s2115_s1 = smov 512   ;;  %s2116_s9 = smov 32  }
  0x23   :  { %22 = dma.hbm_to_vmem [thread:$0]  %s2273_s0, 1024, %s17_s27, [#allocation3], %s2115_s1, %s2115_s1, %s2116_s9  }
  0x24   :  { %s2117_s12 = smov [#allocation7]   ;;  %s2061_s16 = scalar_lea.hbm %s2275_s2, 16 }
  0x25   :  { %s41_s13 = sshll.u32 %s2117_s12, 4  ;;  %p2062_p2 = scmp.ne.s32.totalorder %s2275_s2, %s2061_s16  ;;  %s42_s13 = int_to_ptr.vmem [resolvable:$true] %s41_s13 }
  0x26   :  { %p2065_p3 = scmp.lt.u32.totalorder %s2061_s16, %s2275_s2 }
  0x28   :  { %p2067_p4 = pnand %p2065_p3, %p2062_p2 }
  0x2a   :  { %2070 = shalt.err (!%p2067_p4)
}
  0x2b   :  { %s2071_s21 = scalar_lea.vmem %s42_s13, 16  ;;  %s2075_s0 = scalar_lea.vmem %s42_s13, 32 }
  0x2c   :  { %p2072_p5 = scmp.ne.s32.totalorder %s42_s13, %s2071_s21  ;;  %p2076_p6 = scmp.lt.s32.totalorder %s42_s13, %s42_s13 }
  0x2d   :  { %p2077_p7 = scmp.lt.s32.totalorder %s2075_s0, %s2071_s21 }
  0x2f   :  { %p2078_p8 = por %p2077_p7, %p2076_p6 }
  0x31   :  { %p2079_p9 = pnand %p2078_p8, %p2072_p5 }
  0x33   :  { %2082 = shalt.err (!%p2079_p9)
}
  0x34   :  { %44 = dma.hbm_to_vmem [thread:$0]  %s2275_s2, 16, %s42_s13, [#allocation6]  }
  0x35   :  { %2105 = dma.done.wait [#allocation3], 1024  }
  0x36   :  { %2106 = vsyncadd [#allocation3], 4294966272 }
  0x37   :  { %2107 = dma.done.wait [#allocation6], 16400  }
  0x38   :  { %2108 = vsyncadd [#allocation6], 4294950896  ;;  %v1889_v0 = vld [vmem:[#allocation5 + $0x84] ss:$8 sps:$4 sm:$0xff]   ;;  %v1893_v4 = vld [vmem:[#allocation5 + $0x94] ss:$8 sps:$4 sm:$0xff]  }
  0x39   :  { %v1890_v1 = vld [vmem:[#allocation5 + $0x184] ss:$8 sps:$4 sm:$0xff]   ;;  %1704 = vmatprep.subr.bf16.mxu0 %v1889_v0  ;;  %v1894_v5 = vld [vmem:[#allocation5 + $0x194] ss:$8 sps:$4 sm:$0xff]   ;;  %s2118_s2 = smov [#allocation8]  }
  0x3a   :  { %v1891_v2 = vld [vmem:[#allocation5 + $0x4] ss:$8 sps:$4 sm:$0xff]   ;;  %1726 = vmatprep.subr.bf16.mxu1 %v1890_v1  ;;  %v1895_v6 = vld [vmem:[#allocation5 + $0x14] ss:$8 sps:$4 sm:$0xff]   ;;  %s1544_s26 = sshll.u32 %s2118_s2, 4  ;;  %s1545_s26 = int_to_ptr.vmem [resolvable:$true] %s1544_s26 }
  0x3b   :  { %v1892_v3 = vld [vmem:[#allocation5 + $0x104] ss:$8 sps:$4 sm:$0xff]   ;;  %1705 = vmatpush3.bf16.msra.mxu0 %v1891_v2  ;;  %v1896_v7 = vld [vmem:[#allocation5 + $0x114] ss:$8 sps:$4 sm:$0xff]   ;;  %s2083_s27 = scalar_lea.vmem %s1545_s26, 256  ;;  %p2088_p11 = scmp.lt.s32.totalorder %s1545_s26, %s1545_s26 }
  0x3c   :  { %1727 = vmatpush3.bf16.msra.mxu1 %v1892_v3  ;;  %1706 = vmatprep.subr.bf16.mxu0 %v1893_v4  ;;  %v1897_v8 = vld [vmem:[#allocation5 + $0xa4] ss:$8 sps:$4 sm:$0xff]   ;;  %v1901_v12 = vld [vmem:[#allocation5 + $0xb4] ss:$8 sps:$4 sm:$0xff]   ;;  %p2084_p10 = scmp.ne.s32.totalorder %s1545_s26, %s2083_s27  ;;  %p2089_p12 = scmp.lt.s32.totalorder %s2083_s27, %s2083_s27 }
  0x3d   :  { %1728 = vmatprep.subr.bf16.mxu1 %v1894_v5  ;;  %v1898_v9 = vld [vmem:[#allocation5 + $0x1a4] ss:$8 sps:$4 sm:$0xff]   ;;  %v1902_v13 = vld [vmem:[#allocation5 + $0x1b4] ss:$8 sps:$4 sm:$0xff]  }
  0x3e   :  { %v1899_v10 = vld [vmem:[#allocation5 + $0x24] ss:$8 sps:$4 sm:$0xff]   ;;  %v1903_v14 = vld [vmem:[#allocation5 + $0x34] ss:$8 sps:$4 sm:$0xff]   ;;  %p2090_p13 = por %p2089_p12, %p2088_p11 }
  0x3f   :  { %1707 = vmatpush3.bf16.msra.mxu0 %v1895_v6  ;;  %v1900_v11 = vld [vmem:[#allocation5 + $0x124] ss:$8 sps:$4 sm:$0xff]   ;;  %v1904_v15 = vld [vmem:[#allocation5 + $0x134] ss:$8 sps:$4 sm:$0xff]  }
  0x40   :  { %1729 = vmatpush3.bf16.msra.mxu1 %v1896_v7  ;;  %1708 = vmatprep.subr.bf16.mxu0 %v1897_v8  ;;  %v1905_v16 = vld [vmem:[#allocation5 + $0xc4] ss:$8 sps:$4 sm:$0xff]   ;;  %v1909_v20 = vld [vmem:[#allocation5 + $0xd4] ss:$8 sps:$4 sm:$0xff]   ;;  %p2091_p0 = pnand %p2090_p13, %p2084_p10 }
  0x41   :  { %1730 = vmatprep.subr.bf16.mxu1 %v1898_v9  ;;  %v1906_v17 = vld [vmem:[#allocation5 + $0x1c4] ss:$8 sps:$4 sm:$0xff]   ;;  %v1910_v21 = vld [vmem:[#allocation5 + $0x1d4] ss:$8 sps:$4 sm:$0xff]  }
  0x42   :  { %v1907_v18 = vld [vmem:[#allocation5 + $0x44] ss:$8 sps:$4 sm:$0xff]   ;;  %v1911_v22 = vld [vmem:[#allocation5 + $0x54] ss:$8 sps:$4 sm:$0xff]  }
  0x43   :  { %1709 = vmatpush3.bf16.msra.mxu0 %v1899_v10  ;;  %v1908_v19 = vld [vmem:[#allocation5 + $0x144] ss:$8 sps:$4 sm:$0xff]   ;;  %v1912_v23 = vld [vmem:[#allocation5 + $0x154] ss:$8 sps:$4 sm:$0xff]  }
  0x44   :  { %1731 = vmatpush3.bf16.msra.mxu1 %v1900_v11  ;;  %1710 = vmatprep.subr.bf16.mxu0 %v1901_v12  ;;  %v1913_v24 = vld [vmem:[#allocation5 + $0xe4] ss:$8 sps:$4 sm:$0xff]   ;;  %v1917_v28 = vld [vmem:[#allocation5 + $0xf4] ss:$8 sps:$4 sm:$0xff]  }
  0x45   :  { %1732 = vmatprep.subr.bf16.mxu1 %v1902_v13  ;;  %v1914_v25 = vld [vmem:[#allocation5 + $0x1e4] ss:$8 sps:$4 sm:$0xff]   ;;  %v1918_v29 = vld [vmem:[#allocation5 + $0x1f4] ss:$8 sps:$4 sm:$0xff]  }
  0x46   :  { %v1915_v26 = vld [vmem:[#allocation5 + $0x64] ss:$8 sps:$4 sm:$0xff]   ;;  %v1919_v30 = vld [vmem:[#allocation5 + $0x74] ss:$8 sps:$4 sm:$0xff]  }
  0x47   :  { %1711 = vmatpush3.bf16.msra.mxu0 %v1903_v14  ;;  %v1916_v27 = vld [vmem:[#allocation5 + $0x164] ss:$8 sps:$4 sm:$0xff]   ;;  %v1920_v31 = vld [vmem:[#allocation5 + $0x174] ss:$8 sps:$4 sm:$0xff]  }
  0x48   :  { %1733 = vmatpush3.bf16.msra.mxu1 %v1904_v15  ;;  %1712 = vmatprep.subr.bf16.mxu0 %v1905_v16  ;;  %v2178_v32 = vld [vmem:[#allocation2] sm:$0xff]  ;;  %v2182_v34 = vld [vmem:[#allocation2 + $0x8] sm:$0xff]  ;;  %v1925_v44 = vld [vmem:[#allocation5 + $0x294] ss:$8 sps:$4 sm:$0xff]  }
  0x49   :  { %1734 = vmatprep.subr.bf16.mxu1 %v1906_v17  ;;  %v2180_v33 = vld [vmem:[#allocation2 + $0x20] sm:$0xff]  ;;  %v2186_v36 = vld [vmem:[#allocation2 + $0x28] sm:$0xff]  ;;  %v1926_v45 = vld [vmem:[#allocation5 + $0x394] ss:$8 sps:$4 sm:$0xff]   ;;  %v2196_v6 = vmul.bf16 %v2178_v32, %v2178_v32  ;;  %v2204_v9 = vmul.bf16 %v2182_v34, %v2182_v34 }
  0x4a   :  { %v1560_v35 = vcombine.high %v2178_v32, %v2180_v33  ;;  %v1562_v37 = vcombine.high %v2182_v34, %v2186_v36  ;;  %v1559_v38 = vcombine.low %v2178_v32, %v2180_v33  ;;  %v1561_v39 = vcombine.low %v2182_v34, %v2186_v36  ;;  %v1921_v40 = vld [vmem:[#allocation5 + $0x284] ss:$8 sps:$4 sm:$0xff]   ;;  %v1927_v46 = vld [vmem:[#allocation5 + $0x214] ss:$8 sps:$4 sm:$0xff]   ;;  %v1963_v32 = vld [vmem:[#allocation5 + $0x20] ss:$8 sps:$4 sm:$0xff]  }
  0x4b   :  { %1713 = vmatpush3.bf16.msra.mxu0 %v1907_v18  ;;  %v1922_v41 = vld [vmem:[#allocation5 + $0x384] ss:$8 sps:$4 sm:$0xff]   ;;  %v1928_v47 = vld [vmem:[#allocation5 + $0x314] ss:$8 sps:$4 sm:$0xff]   ;;  %v2200_v7 = vmul.bf16 %v2180_v33, %v2180_v33  ;;  %v2208_v10 = vmul.bf16 %v2186_v36, %v2186_v36  ;;  %v1964_v33 = vld [vmem:[#allocation5 + $0x120] ss:$8 sps:$4 sm:$0xff]  }
  0x4c   :  { %1735 = vmatpush3.bf16.msra.mxu1 %v1908_v19  ;;  %1714 = vmatprep.subr.bf16.mxu0 %v1909_v20  ;;  %v1923_v42 = vld [vmem:[#allocation5 + $0x204] ss:$8 sps:$4 sm:$0xff]   ;;  %v1933_v52 = vld [vmem:[#allocation5 + $0x2b4] ss:$8 sps:$4 sm:$0xff]   ;;  %v1953_v20 = vld [vmem:[#allocation5 + $0x80] ss:$8 sps:$4 sm:$0xff]  }
  0x4d   :  { %1736 = vmatprep.subr.bf16.mxu1 %v1910_v21  ;;  %797 = vmatprep.mubr.bf16.mxu0 %v1560_v35  ;;  %v1924_v43 = vld [vmem:[#allocation5 + $0x304] ss:$8 sps:$4 sm:$0xff]   ;;  %v1934_v53 = vld [vmem:[#allocation5 + $0x3b4] ss:$8 sps:$4 sm:$0xff]   ;;  %v1954_v21 = vld [vmem:[#allocation5 + $0x180] ss:$8 sps:$4 sm:$0xff]  }
  0x4e   :  { %838 = vmatprep.mubr.bf16.mxu1 %v1562_v37  ;;  %v1929_v48 = vld [vmem:[#allocation5 + $0x2a4] ss:$8 sps:$4 sm:$0xff]   ;;  %v1935_v54 = vld [vmem:[#allocation5 + $0x234] ss:$8 sps:$4 sm:$0xff]   ;;  %v1965_v34 = vld [vmem:[#allocation5 + $0xb0] ss:$8 sps:$4 sm:$0xff]  }
  0x4f   :  { %1715 = vmatpush3.bf16.msra.mxu0 %v1911_v22  ;;  %v1930_v49 = vld [vmem:[#allocation5 + $0x3a4] ss:$8 sps:$4 sm:$0xff]   ;;  %v1936_v55 = vld [vmem:[#allocation5 + $0x334] ss:$8 sps:$4 sm:$0xff]   ;;  %v1632_v22 = vcombine.high %v2196_v6, %v2200_v7  ;;  %v1966_v35 = vld [vmem:[#allocation5 + $0x1b0] ss:$8 sps:$4 sm:$0xff]  }
  0x50   :  { %1737 = vmatpush3.bf16.msra.mxu1 %v1912_v23  ;;  %1716 = vmatprep.subr.bf16.mxu0 %v1913_v24  ;;  %v1931_v50 = vld [vmem:[#allocation5 + $0x224] ss:$8 sps:$4 sm:$0xff]   ;;  %v1941_v60 = vld [vmem:[#allocation5 + $0x2d4] ss:$8 sps:$4 sm:$0xff]   ;;  %v1955_v23 = vld [vmem:[#allocation5] ss:$8 sps:$4 sm:$0xff]   ;;  %v1634_v24 = vcombine.high %v2204_v9, %v2208_v10 }
  0x51   :  { %1738 = vmatprep.subr.bf16.mxu1 %v1914_v25  ;;  %v1932_v51 = vld [vmem:[#allocation5 + $0x324] ss:$8 sps:$4 sm:$0xff]   ;;  %v1942_v61 = vld [vmem:[#allocation5 + $0x3d4] ss:$8 sps:$4 sm:$0xff]   ;;  %v1956_v25 = vld [vmem:[#allocation5 + $0x100] ss:$8 sps:$4 sm:$0xff]  }
  0x52   :  { %v1937_v56 = vld [vmem:[#allocation5 + $0x2c4] ss:$8 sps:$4 sm:$0xff]   ;;  %v1943_v62 = vld [vmem:[#allocation5 + $0x254] ss:$8 sps:$4 sm:$0xff]   ;;  %v1967_v36 = vld [vmem:[#allocation5 + $0x30] ss:$8 sps:$4 sm:$0xff]  }
  0x53   :  { %1717 = vmatpush3.bf16.msra.mxu0 %v1915_v26  ;;  %v1938_v57 = vld [vmem:[#allocation5 + $0x3c4] ss:$8 sps:$4 sm:$0xff]   ;;  %v1944_v63 = vld [vmem:[#allocation5 + $0x354] ss:$8 sps:$4 sm:$0xff]   ;;  %v1957_v26 = vld [vmem:[#allocation5 + $0x90] ss:$8 sps:$4 sm:$0xff]  }
  0x54   :  { %1739 = vmatpush3.bf16.msra.mxu1 %v1916_v27  ;;  %1718 = vmatprep.subr.bf16.mxu0 %v1917_v28  ;;  %v1939_v58 = vld [vmem:[#allocation5 + $0x244] ss:$8 sps:$4 sm:$0xff]   ;;  %v1949_v4 = vld [vmem:[#allocation5 + $0x2f4] ss:$8 sps:$4 sm:$0xff]   ;;  %v1958_v27 = vld [vmem:[#allocation5 + $0x190] ss:$8 sps:$4 sm:$0xff]  }
  0x55   :  { %1740 = vmatprep.subr.bf16.mxu1 %v1918_v29  ;;  %v1940_v59 = vld [vmem:[#allocation5 + $0x344] ss:$8 sps:$4 sm:$0xff]   ;;  %v1950_v5 = vld [vmem:[#allocation5 + $0x3f4] ss:$8 sps:$4 sm:$0xff]   ;;  %v1959_v28 = vld [vmem:[#allocation5 + $0x10] ss:$8 sps:$4 sm:$0xff]  }
  0x56   :  { %v1945_v0 = vld [vmem:[#allocation5 + $0x2e4] ss:$8 sps:$4 sm:$0xff]   ;;  %v1951_v8 = vld [vmem:[#allocation5 + $0x274] ss:$8 sps:$4 sm:$0xff]   ;;  %v1960_v29 = vld [vmem:[#allocation5 + $0x110] ss:$8 sps:$4 sm:$0xff]  }
  0x57   :  { %1719 = vmatpush3.bf16.msra.mxu0 %v1919_v30  ;;  %v1946_v1 = vld [vmem:[#allocation5 + $0x3e4] ss:$8 sps:$4 sm:$0xff]   ;;  %v1952_v11 = vld [vmem:[#allocation5 + $0x374] ss:$8 sps:$4 sm:$0xff]   ;;  %v1961_v30 = vld [vmem:[#allocation5 + $0xa0] ss:$8 sps:$4 sm:$0xff]  }
  0x58   :  { %1741 = vmatpush3.bf16.msra.mxu1 %v1920_v31  ;;  %1748 = vmatprep.subr.bf16.mxu0 %v1921_v40  ;;  %v1947_v2 = vld [vmem:[#allocation5 + $0x264] ss:$8 sps:$4 sm:$0xff]   ;;  %v2210_v12 = vld [vmem:[#allocation2 + $0x10] sm:$0xff]  ;;  %v2216_v15 = vld [vmem:[#allocation2 + $0x18] sm:$0xff] }
  0x59   :  { %1770 = vmatprep.subr.bf16.mxu1 %v1922_v41  ;;  %v1948_v3 = vld [vmem:[#allocation5 + $0x364] ss:$8 sps:$4 sm:$0xff]   ;;  %v2212_v13 = vld [vmem:[#allocation2 + $0x30] sm:$0xff]  ;;  %v2218_v16 = vld [vmem:[#allocation2 + $0x38] sm:$0xff] }
  0x5a   :  { %798 = vmatmul.mubr.bf16.vlgmr.msra.gmra.mrb[0].mxu0 %v1559_v38  ;;  %v1564_v14 = vcombine.high %v2210_v12, %v2212_v13  ;;  %v1563_v17 = vcombine.low %v2210_v12, %v2212_v13  ;;  %v1566_v18 = vcombine.high %v2216_v15, %v2218_v16  ;;  %v1565_v19 = vcombine.low %v2216_v15, %v2218_v16  ;;  %v1962_v31 = vld [vmem:[#allocation5 + $0x1a0] ss:$8 sps:$4 sm:$0xff]   ;;  %v1968_v37 = vld [vmem:[#allocation5 + $0x130] ss:$8 sps:$4 sm:$0xff]  }
  0x5b   :  { %839 = vmatmul.mubr.bf16.vlgmr.msra.gmra.mrb[0].mxu1 %v1561_v39  ;;  %1749 = vmatpush3.bf16.msra.mxu0 %v1923_v42  ;;  %v1969_v38 = vld [vmem:[#allocation5 + $0xc0] ss:$8 sps:$4 sm:$0xff]   ;;  %v1973_v42 = vld [vmem:[#allocation5 + $0xd0] ss:$8 sps:$4 sm:$0xff]  }
  0x5c   :  { %1771 = vmatpush3.bf16.msra.mxu1 %v1924_v43  ;;  %1750 = vmatprep.subr.bf16.mxu0 %v1925_v44  ;;  %v1970_v39 = vld [vmem:[#allocation5 + $0x1c0] ss:$8 sps:$4 sm:$0xff]   ;;  %v1974_v43 = vld [vmem:[#allocation5 + $0x1d0] ss:$8 sps:$4 sm:$0xff]  }
  0x5d   :  { %1772 = vmatprep.subr.bf16.mxu1 %v1926_v45  ;;  %879 = vmatprep.mubr.bf16.mxu0 %v1564_v14  ;;  %v1971_v40 = vld [vmem:[#allocation5 + $0x40] ss:$8 sps:$4 sm:$0xff]   ;;  %v1975_v44 = vld [vmem:[#allocation5 + $0x50] ss:$8 sps:$4 sm:$0xff]  }
  0x5e   :  { %920 = vmatprep.mubr.bf16.mxu1 %v1566_v18  ;;  %v1972_v41 = vld [vmem:[#allocation5 + $0x140] ss:$8 sps:$4 sm:$0xff]   ;;  %v1976_v45 = vld [vmem:[#allocation5 + $0x150] ss:$8 sps:$4 sm:$0xff]  }
  0x5f   :  { %1751 = vmatpush3.bf16.msra.mxu0 %v1927_v46  ;;  %v1977_v46 = vld [vmem:[#allocation5 + $0xe0] ss:$8 sps:$4 sm:$0xff]   ;;  %v2005_v18 = vld [vmem:[#allocation5 + $0x2d0] ss:$8 sps:$4 sm:$0xff]  }
  0x60   :  { %1773 = vmatpush3.bf16.msra.mxu1 %v1928_v47  ;;  %1752 = vmatprep.subr.bf16.mxu0 %v1929_v48  ;;  %v1978_v47 = vld [vmem:[#allocation5 + $0x1e0] ss:$8 sps:$4 sm:$0xff]  }
  0x61   :  { %1774 = vmatprep.subr.bf16.mxu1 %v1930_v49  ;;  %v1979_v48 = vld [vmem:[#allocation5 + $0x60] ss:$8 sps:$4 sm:$0xff]  }
  0x62   :  { %v1980_v49 = vld [vmem:[#allocation5 + $0x160] ss:$8 sps:$4 sm:$0xff]  }
  0x63   :  { %1753 = vmatpush3.bf16.msra.mxu0 %v1931_v50  ;;  %v1981_v50 = vld [vmem:[#allocation5 + $0xf0] ss:$8 sps:$4 sm:$0xff]   ;;  %v2001_v14 = vld [vmem:[#allocation5 + $0x2c0] ss:$8 sps:$4 sm:$0xff]  }
  0x64   :  { %1775 = vmatpush3.bf16.msra.mxu1 %v1932_v51  ;;  %1754 = vmatprep.subr.bf16.mxu0 %v1933_v52  ;;  %v1982_v51 = vld [vmem:[#allocation5 + $0x1f0] ss:$8 sps:$4 sm:$0xff]   ;;  %v2232_v52 = vmul.bf16 %v2210_v12, %v2210_v12 }
  0x65   :  { %1776 = vmatprep.subr.bf16.mxu1 %v1934_v53  ;;  %v2236_v53 = vmul.bf16 %v2212_v13, %v2212_v13  ;;  %v1999_v12 = vld [vmem:[#allocation5 + $0x230] ss:$8 sps:$4 sm:$0xff]  }
  0x66   :  { %v2000_v13 = vld [vmem:[#allocation5 + $0x330] ss:$8 sps:$4 sm:$0xff]  }
  0x67   :  { %1755 = vmatpush3.bf16.msra.mxu0 %v1935_v54  ;;  %v1983_v54 = vld [vmem:[#allocation5 + $0x70] ss:$8 sps:$4 sm:$0xff]  }
  0x68   :  { %1777 = vmatpush3.bf16.msra.mxu1 %v1936_v55  ;;  %1756 = vmatprep.subr.bf16.mxu0 %v1937_v56  ;;  %v2240_v55 = vmul.bf16 %v2216_v15, %v2216_v15  ;;  %v2244_v56 = vmul.bf16 %v2218_v16, %v2218_v16  ;;  %v2002_v15 = vld [vmem:[#allocation5 + $0x3c0] ss:$8 sps:$4 sm:$0xff]  }
  0x69   :  { %1778 = vmatprep.subr.bf16.mxu1 %v1938_v57  ;;  %v1631_v57 = vcombine.low %v2196_v6, %v2200_v7  ;;  %v1993_v6 = vld [vmem:[#allocation5 + $0x2a0] ss:$8 sps:$4 sm:$0xff]  }
  0x6a   :  { %v1994_v7 = vld [vmem:[#allocation5 + $0x3a0] ss:$8 sps:$4 sm:$0xff]  }
  0x6b   :  { %1757 = vmatpush3.bf16.msra.mxu0 %v1939_v58  ;;  %v1984_v58 = vld [vmem:[#allocation5 + $0x170] ss:$8 sps:$4 sm:$0xff]   ;;  %v2003_v16 = vld [vmem:[#allocation5 + $0x240] ss:$8 sps:$4 sm:$0xff]  }
  0x6c   :  { %1779 = vmatpush3.bf16.msra.mxu1 %v1940_v59  ;;  %1758 = vmatprep.subr.bf16.mxu0 %v1941_v60  ;;  %v1633_v59 = vcombine.low %v2204_v9, %v2208_v10  ;;  %v1985_v60 = vld [vmem:[#allocation5 + $0x280] ss:$8 sps:$4 sm:$0xff]   ;;  %v1997_v10 = vld [vmem:[#allocation5 + $0x2b0] ss:$8 sps:$4 sm:$0xff]  }
  0x6d   :  { %1780 = vmatprep.subr.bf16.mxu1 %v1942_v61  ;;  %v1986_v61 = vld [vmem:[#allocation5 + $0x380] ss:$8 sps:$4 sm:$0xff]  }
  0x6e   :  { %v1996_v9 = vld [vmem:[#allocation5 + $0x320] ss:$8 sps:$4 sm:$0xff]  }
  0x6f   :  { %1759 = vmatpush3.bf16.msra.mxu0 %v1943_v62  ;;  %v1636_v62 = vcombine.high %v2232_v52, %v2236_v53 }
  0x70   :  { %1781 = vmatpush3.bf16.msra.mxu1 %v1944_v63  ;;  %1760 = vmatprep.subr.bf16.mxu0 %v1945_v0  ;;  %v1987_v63 = vld [vmem:[#allocation5 + $0x200] ss:$8 sps:$4 sm:$0xff]   ;;  %v1638_v0 = vcombine.high %v2240_v55, %v2244_v56 }
  0x71   :  { %1782 = vmatprep.subr.bf16.mxu1 %v1946_v1  ;;  %v1988_v1 = vld [vmem:[#allocation5 + $0x300] ss:$8 sps:$4 sm:$0xff]  }
  0x73   :  { %1761 = vmatpush3.bf16.msra.mxu0 %v1947_v2  ;;  %v1989_v2 = vld [vmem:[#allocation5 + $0x290] ss:$8 sps:$4 sm:$0xff]  }
  0x74   :  { %1783 = vmatpush3.bf16.msra.mxu1 %v1948_v3  ;;  %1762 = vmatprep.subr.bf16.mxu0 %v1949_v4  ;;  %v1990_v3 = vld [vmem:[#allocation5 + $0x390] ss:$8 sps:$4 sm:$0xff]  }
  0x75   :  { %1784 = vmatprep.subr.bf16.mxu1 %v1950_v5  ;;  %v1991_v4 = vld [vmem:[#allocation5 + $0x210] ss:$8 sps:$4 sm:$0xff]  }
  0x76   :  { %v1992_v5 = vld [vmem:[#allocation5 + $0x310] ss:$8 sps:$4 sm:$0xff]  }
  0x77   :  { %1763 = vmatpush3.bf16.msra.mxu0 %v1951_v8  ;;  %v1995_v8 = vld [vmem:[#allocation5 + $0x220] ss:$8 sps:$4 sm:$0xff]  }
  0x78   :  { %1785 = vmatpush3.bf16.msra.mxu1 %v1952_v11  ;;  %1792 = vmatprep.subr.bf16.mxu0 %v1953_v20  ;;  %v1998_v11 = vld [vmem:[#allocation5 + $0x3b0] ss:$8 sps:$4 sm:$0xff]  }
  0x79   :  { %1814 = vmatprep.subr.bf16.mxu1 %v1954_v21  ;;  %v2007_v20 = vld [vmem:[#allocation5 + $0x250] ss:$8 sps:$4 sm:$0xff]  }
  0x7a   :  { %880 = vmatmul.mubr.bf16.vlgmr.msra.gmra.mrb[4].mxu0 %v1563_v17  ;;  %v2004_v17 = vld [vmem:[#allocation5 + $0x340] ss:$8 sps:$4 sm:$0xff]   ;;  %v2008_v21 = vld [vmem:[#allocation5 + $0x350] ss:$8 sps:$4 sm:$0xff]  }
  0x7b   :  { %921 = vmatmul.mubr.bf16.vlgmr.msra.gmra.mrb[4].mxu1 %v1565_v19  ;;  %1793 = vmatpush3.bf16.msra.mxu0 %v1955_v23  ;;  %v2006_v19 = vld [vmem:[#allocation5 + $0x3d0] ss:$8 sps:$4 sm:$0xff]   ;;  %v2010_v23 = vld [vmem:[#allocation5 + $0x3e0] ss:$8 sps:$4 sm:$0xff]  }
  0x7c   :  { %1815 = vmatpush3.bf16.msra.mxu1 %v1956_v25  ;;  %1385 = vmatprep.mubr.bf16.mxu0 %v1632_v22  ;;  %v2009_v22 = vld [vmem:[#allocation5 + $0x2e0] ss:$8 sps:$4 sm:$0xff]  }
  0x7d   :  { %1794 = vmatprep.subr.bf16.mxu0 %v1957_v26  ;;  %1426 = vmatprep.mubr.bf16.mxu1 %v1634_v24  ;;  %v2011_v24 = vld [vmem:[#allocation5 + $0x260] ss:$8 sps:$4 sm:$0xff]   ;;  %v2013_v26 = vld [vmem:[#allocation5 + $0x2f0] ss:$8 sps:$4 sm:$0xff]  }
  0x7e   :  { %1816 = vmatprep.subr.bf16.mxu1 %v1958_v27  ;;  %v2012_v25 = vld [vmem:[#allocation5 + $0x360] ss:$8 sps:$4 sm:$0xff]   ;;  %v2014_v27 = vld [vmem:[#allocation5 + $0x3f0] ss:$8 sps:$4 sm:$0xff]  }
  0x7f   :  { %1795 = vmatpush3.bf16.msra.mxu0 %v1959_v28  ;;  %v2015_v28 = vld [vmem:[#allocation5 + $0x270] ss:$8 sps:$4 sm:$0xff]  }
  0x80   :  { %1817 = vmatpush3.bf16.msra.mxu1 %v1960_v29  ;;  %1796 = vmatprep.subr.bf16.mxu0 %v1961_v30  ;;  %v2016_v29 = vld [vmem:[#allocation5 + $0x370] ss:$8 sps:$4 sm:$0xff]   ;;  %v1635_v30 = vcombine.low %v2232_v52, %v2236_v53 }
  0x81   :  { %1818 = vmatprep.subr.bf16.mxu1 %v1962_v31  ;;  %v1637_v31 = vcombine.low %v2240_v55, %v2244_v56 }
  0x83   :  { %1797 = vmatpush3.bf16.msra.mxu0 %v1963_v32 }
  0x84   :  { %1819 = vmatpush3.bf16.msra.mxu1 %v1964_v33  ;;  %1798 = vmatprep.subr.bf16.mxu0 %v1965_v34 }
  0x85   :  { %1820 = vmatprep.subr.bf16.mxu1 %v1966_v35 }
  0x87   :  { %1799 = vmatpush3.bf16.msra.mxu0 %v1967_v36 }
  0x88   :  { %1821 = vmatpush3.bf16.msra.mxu1 %v1968_v37  ;;  %1800 = vmatprep.subr.bf16.mxu0 %v1969_v38 }
  0x89   :  { %1822 = vmatprep.subr.bf16.mxu1 %v1970_v39 }
  0x8b   :  { %1801 = vmatpush3.bf16.msra.mxu0 %v1971_v40 }
  0x8c   :  { %1823 = vmatpush3.bf16.msra.mxu1 %v1972_v41  ;;  %1802 = vmatprep.subr.bf16.mxu0 %v1973_v42 }
  0x8d   :  { %1824 = vmatprep.subr.bf16.mxu1 %v1974_v43 }
  0x8f   :  { %1803 = vmatpush3.bf16.msra.mxu0 %v1975_v44 }
  0x90   :  { %1825 = vmatpush3.bf16.msra.mxu1 %v1976_v45  ;;  %1804 = vmatprep.subr.bf16.mxu0 %v1977_v46 }
  0x91   :  { %1826 = vmatprep.subr.bf16.mxu1 %v1978_v47 }
  0x93   :  { %1805 = vmatpush3.bf16.msra.mxu0 %v1979_v48 }
  0x94   :  { %1827 = vmatpush3.bf16.msra.mxu1 %v1980_v49  ;;  %1806 = vmatprep.subr.bf16.mxu0 %v1981_v50 }
  0x95   :  { %1828 = vmatprep.subr.bf16.mxu1 %v1982_v51 }
  0x97   :  { %1807 = vmatpush3.bf16.msra.mxu0 %v1983_v54 }
  0x98   :  { %1829 = vmatpush3.bf16.msra.mxu1 %v1984_v58  ;;  %1836 = vmatprep.subr.bf16.mxu0 %v1985_v60 }
  0x99   :  { %1858 = vmatprep.subr.bf16.mxu1 %v1986_v61 }
  0x9a   :  { %1386 = vmatmul.mubr.bf16.vlgmr.msra.gmra.mrb[8].mxu0 %v1631_v57 }
  0x9b   :  { %1427 = vmatmul.mubr.bf16.vlgmr.msra.gmra.mrb[8].mxu1 %v1633_v59  ;;  %1837 = vmatpush3.bf16.msra.mxu0 %v1987_v63 }
  0x9c   :  { %1859 = vmatpush3.bf16.msra.mxu1 %v1988_v1  ;;  %1467 = vmatprep.mubr.bf16.mxu0 %v1636_v62 }
  0x9d   :  { %1838 = vmatprep.subr.bf16.mxu0 %v1989_v2  ;;  %1508 = vmatprep.mubr.bf16.mxu1 %v1638_v0 }
  0x9e   :  { %1860 = vmatprep.subr.bf16.mxu1 %v1990_v3 }
  0x9f   :  { %1839 = vmatpush3.bf16.msra.mxu0 %v1991_v4 }
  0xa0   :  { %1861 = vmatpush3.bf16.msra.mxu1 %v1992_v5  ;;  %1840 = vmatprep.subr.bf16.mxu0 %v1993_v6 }
  0xa1   :  { %1862 = vmatprep.subr.bf16.mxu1 %v1994_v7 }
  0xa3   :  { %1841 = vmatpush3.bf16.msra.mxu0 %v1995_v8 }
  0xa4   :  { %1863 = vmatpush3.bf16.msra.mxu1 %v1996_v9  ;;  %1842 = vmatprep.subr.bf16.mxu0 %v1997_v10 }
  0xa5   :  { %1864 = vmatprep.subr.bf16.mxu1 %v1998_v11 }
  0xa7   :  { %1843 = vmatpush3.bf16.msra.mxu0 %v1999_v12 }
  0xa8   :  { %1865 = vmatpush3.bf16.msra.mxu1 %v2000_v13  ;;  %1844 = vmatprep.subr.bf16.mxu0 %v2001_v14 }
  0xa9   :  { %1866 = vmatprep.subr.bf16.mxu1 %v2002_v15 }
  0xab   :  { %1845 = vmatpush3.bf16.msra.mxu0 %v2003_v16 }
  0xac   :  { %1867 = vmatpush3.bf16.msra.mxu1 %v2004_v17  ;;  %1846 = vmatprep.subr.bf16.mxu0 %v2005_v18 }
  0xad   :  { %1868 = vmatprep.subr.bf16.mxu1 %v2006_v19 }
  0xaf   :  { %1847 = vmatpush3.bf16.msra.mxu0 %v2007_v20 }
  0xb0   :  { %1869 = vmatpush3.bf16.msra.mxu1 %v2008_v21  ;;  %1848 = vmatprep.subr.bf16.mxu0 %v2009_v22 }
  0xb1   :  { %1870 = vmatprep.subr.bf16.mxu1 %v2010_v23 }
  0xb3   :  { %1849 = vmatpush3.bf16.msra.mxu0 %v2011_v24 }
  0xb4   :  { %1871 = vmatpush3.bf16.msra.mxu1 %v2012_v25  ;;  %1850 = vmatprep.subr.bf16.mxu0 %v2013_v26 }
  0xb5   :  { %1872 = vmatprep.subr.bf16.mxu1 %v2014_v27 }
  0xb7   :  { %1851 = vmatpush3.bf16.msra.mxu0 %v2015_v28 }
  0xb8   :  { %1873 = vmatpush3.bf16.msra.mxu1 %v2016_v29 }
  0xba   :  { %1468 = vmatmul.mubr.bf16.vlgmr.msra.gmra.mrb[12].mxu0 %v1635_v30  ;;  %v1703_v30 = vld [vmem:[#allocation7] ss:$0 sm:$0xff] }
  0xbb   :  { %1509 = vmatmul.mubr.bf16.vlgmr.msra.gmra.mrb[12].mxu1 %v1637_v31 }
 0x12d   :  { %v1720_v32 = vpop.f32.mrb[0].mxu0 }
 0x12e   :  { %v1742_v33 = vpop.f32.mrb[0].mxu1  ;;  %v1721_v34 = vpop.f32.mrb[1].mxu0 }
 0x12f   :  { %v1722_v35 = vadd.f32 %v1721_v34, %v1720_v32  ;;  %v1743_v36 = vpop.f32.mrb[1].mxu1  ;;  %v1723_v37 = vpop.f32.mrb[2].mxu0 }
 0x130   :  { %v1744_v38 = vadd.f32 %v1743_v36, %v1742_v33  ;;  %v1745_v39 = vpop.f32.mrb[2].mxu1  ;;  %v1724_v40 = vpop.f32.mrb[3].mxu0 }
 0x131   :  { %v1725_v41 = vadd.f32 %v1724_v40, %v1723_v37  ;;  %v1746_v42 = vpop.f32.mrb[3].mxu1 }
 0x132   :  { %v841_v43 = vadd.f32 %v1744_v38, %v1722_v35  ;;  %v1747_v44 = vadd.f32 %v1746_v42, %v1745_v39 }
 0x134   :  { %v844_v45 = vadd.f32 %v1747_v44, %v1725_v41 }
 0x14d   :  { %v1764_v46 = vpop.f32.mrb[4].mxu0 }
 0x14e   :  { %v1786_v47 = vpop.f32.mrb[4].mxu1  ;;  %v1765_v48 = vpop.f32.mrb[5].mxu0 }
 0x14f   :  { %v1766_v49 = vadd.f32 %v1765_v48, %v1764_v46  ;;  %v1787_v50 = vpop.f32.mrb[5].mxu1  ;;  %v1767_v51 = vpop.f32.mrb[6].mxu0 }
 0x150   :  { %v1788_v52 = vadd.f32 %v1787_v50, %v1786_v47  ;;  %v1789_v53 = vpop.f32.mrb[6].mxu1  ;;  %v1768_v54 = vpop.f32.mrb[7].mxu0 }
 0x151   :  { %v882_v55 = vadd.f32 %v1766_v49, %v841_v43  ;;  %v1769_v56 = vadd.f32 %v1768_v54, %v1767_v51  ;;  %v1790_v57 = vpop.f32.mrb[7].mxu1 }
 0x152   :  { %v1791_v58 = vadd.f32 %v1790_v57, %v1789_v53 }
 0x153   :  { %v923_v59 = vadd.f32 %v1788_v52, %v882_v55  ;;  %v885_v60 = vadd.f32 %v1769_v56, %v844_v45 }
 0x155   :  { %v926_v61 = vadd.f32 %v1791_v58, %v885_v60 }
 0x16d   :  { %v1808_v62 = vpop.f32.mrb[8].mxu0 }
 0x16e   :  { %v1830_v63 = vpop.f32.mrb[8].mxu1  ;;  %v1809_v0 = vpop.f32.mrb[9].mxu0 }
 0x16f   :  { %v1810_v1 = vadd.f32 %v1809_v0, %v1808_v62  ;;  %v1831_v2 = vpop.f32.mrb[9].mxu1  ;;  %v1811_v3 = vpop.f32.mrb[10].mxu0 }
 0x170   :  { %v1832_v4 = vadd.f32 %v1831_v2, %v1830_v63  ;;  %v1833_v5 = vpop.f32.mrb[10].mxu1  ;;  %v1812_v6 = vpop.f32.mrb[11].mxu0 }
 0x171   :  { %v1388_v7 = vadd.f32 %v1810_v1, %v923_v59  ;;  %v1813_v8 = vadd.f32 %v1812_v6, %v1811_v3  ;;  %v1834_v9 = vpop.f32.mrb[11].mxu1 }
 0x172   :  { %v1835_v10 = vadd.f32 %v1834_v9, %v1833_v5 }
 0x173   :  { %v1429_v11 = vadd.f32 %v1832_v4, %v1388_v7  ;;  %v1391_v12 = vadd.f32 %v1813_v8, %v926_v61 }
 0x175   :  { %v1432_v13 = vadd.f32 %v1835_v10, %v1391_v12 }
 0x18d   :  { %v1852_v14 = vpop.f32.mrb[12].mxu0 }
 0x18e   :  { %v1874_v15 = vpop.f32.mrb[12].mxu1  ;;  %v1853_v16 = vpop.f32.mrb[13].mxu0 }
 0x18f   :  { %v1854_v17 = vadd.f32 %v1853_v16, %v1852_v14  ;;  %v1875_v18 = vpop.f32.mrb[13].mxu1  ;;  %v1855_v19 = vpop.f32.mrb[14].mxu0 }
 0x190   :  { %v1876_v20 = vadd.f32 %v1875_v18, %v1874_v15  ;;  %v1877_v21 = vpop.f32.mrb[14].mxu1  ;;  %v1856_v22 = vpop.f32.mrb[15].mxu0 }
 0x191   :  { %v1470_v23 = vadd.f32 %v1854_v17, %v1429_v11  ;;  %v1857_v24 = vadd.f32 %v1856_v22, %v1855_v19  ;;  %v1878_v25 = vpop.f32.mrb[15].mxu1 }
 0x192   :  { %v1879_v26 = vadd.f32 %v1878_v25, %v1877_v21 }
 0x193   :  { %v1511_v27 = vadd.f32 %v1876_v20, %v1470_v23  ;;  %v1473_v28 = vadd.f32 %v1857_v24, %v1432_v13 }
 0x195   :  { %v1514_v29 = vadd.f32 %v1879_v26, %v1473_v28  ;;  %v1526_v31 = vmul.f32 -0.5, %v1511_v27 }
 0x197   :  { %v1527_v32 = vmul.f32 -0.5, %v1514_v29  ;;  %v1535_v33 = vadd.f32 %v1703_v30, %v1526_v31 }
 0x199   :  { %v1536_v34 = vadd.f32 %v1703_v30, %v1527_v32  ;;  %1537 = vst [vmem:[#allocation8] sm:$0xff] %v1535_v33 }
 0x19b   :  { %1538 = vst [vmem:[#allocation8 + $0x8] sm:$0xff] %v1536_v34 }
 0x19c   :  { %2094 = shalt.err (!%p2091_p0)
}
 0x19d   :  { %s2095_s30 = scalar_lea.hbm %s2276_s3, 256 }
 0x19e   :  { %p2096_p1 = scmp.ne.s32.totalorder %s2276_s3, %s2095_s30  ;;  %p2099_p2 = scmp.lt.u32.totalorder %s2095_s30, %s2276_s3 }
 0x1a0   :  { %p2101_p3 = pnand %p2099_p2, %p2096_p1 }
 0x1a2   :  { %2104 = shalt.err (!%p2101_p3)
}
 0x1a3   :  { %1550 = dma.vmem_to_hbm [thread:$0]  %s1545_s26, 256, %s2276_s3, [#allocation4], %s2112_s22, %s2112_s22, %s2113_s23  }
 0x1a4   :  { %2109 = dma.done.wait [#allocation4], 256  }
 0x1a5   :  { %2110 = vsyncadd [#allocation4], 4294967040 }
 0x1a6   :  { %1554 = vsyncpa [#allocation3], 1 }
 0x1a7   :  { %1555 = vsyncpa [#allocation6], 1 }
 0x1a8   :  { %1556 = vsyncpa [#allocation4], 1 }

</bundles_post_ra>
